<compile_context>
chip_gen: v7x
topology: tpu7x:2x2x1
jax: 0.10.0
libtpu: 0.0.40
codegen_flags: <defaults>
</compile_context>

<pallas_src>
import math

import jax
import jax.numpy as jnp
from jax.experimental import pallas as pl
from jax.experimental.pallas import tpu as pltpu


def _round_up(x, m):
    return ((x + m - 1) // m) * m


_FIELD_SIZES = {"h": [13, 32, 7, 24], "t": [13, 32, 7, 24, 4]}  # month, day, weekday, hour[, minute]


def _sin_table(c, d_model):
    """FixedEmbedding / PositionalEmbedding weight: [sin(k*div), cos(k*div)] rows."""
    position = jnp.arange(c, dtype=jnp.float32)[:, None]
    div_term = jnp.exp(
        jnp.arange(0, d_model, 2, dtype=jnp.float32) * -(math.log(10000.0) / d_model)
    )
    t = jnp.zeros((c, d_model), jnp.float32)
    t = t.at[:, 0::2].set(jnp.sin(position * div_term))
    t = t.at[:, 1::2].set(jnp.cos(position * div_term))
    return t


def _make_kernel(seq_len, has_mark):
    def kernel(*refs):
        if has_mark:
            x3_ref, idx_ref, w3_ref, tbl_ref, trig_ref, o_ref = refs
        else:
            x3_ref, w3_ref, trig_ref, o_ref = refs
        tile_n, d_model = o_ref.shape

        # --- value embedding: circular conv1d (kernel 3) as one MXU matmul ----------
        acc = jnp.dot(x3_ref[...], w3_ref[...], preferred_element_type=jnp.float32)

        # --- temporal embedding: 4 FixedEmbedding gathers fused on the MXU ----------
        if has_mark:
            idx = idx_ref[...]                                    # (tile_n, F) pre-offset ints
            n_rows = tbl_ref.shape[0]
            rows = jax.lax.broadcasted_iota(jnp.int32, (tile_n, n_rows), 1)
            onehot = jnp.zeros((tile_n, n_rows), jnp.float32)
            for f in range(idx_ref.shape[1]):                     # F <= 5, static unroll
                onehot = onehot + (idx[:, f:f + 1] == rows).astype(jnp.float32)
            acc = acc + jnp.dot(onehot, tbl_ref[...], preferred_element_type=jnp.float32)

        # --- positional embedding: single closed-form sin per element ---------------
        # column j:  sin(pos * freq_j + phase_j);  freq/phase are precomputed constants.
        freq = trig_ref[0:1, :]                                   # (1, d_model)
        phase = trig_ref[1:2, :]                                  # (1, d_model)
        row = jax.lax.broadcasted_iota(jnp.int32, (tile_n, 1), 0)
        pos = (pl.program_id(0) * tile_n + row) % seq_len         # position within sequence
        acc = acc + jnp.sin(pos.astype(jnp.float32) * freq + phase)

        o_ref[...] = acc.astype(o_ref.dtype)

    return kernel


def data_embedding(x, x_mark, conv_w, *, freq="h", tile_n=2048, out_dtype=jnp.float32):
    """Fused DataEmbedding.forward (embed_type='fixed', eval mode).

    x:       (B, L, c_in)  float -- values
    x_mark:  (B, L, >=F)   int   -- calendar indices [month, day, weekday, hour(, minute)] or None
    conv_w:  (d_model, c_in, 3)  -- TokenEmbedding Conv1d weight (PyTorch OIH layout)
    returns  (B, L, d_model) out_dtype
    """
    B, L, c_in = x.shape
    d_model = conv_w.shape[0]
    n = B * L
    has_mark = x_mark is not None

    # Circular conv (kernel 3, pad 1, wrap): gather the 3 taps per token once.
    x = x.astype(jnp.float32)
    x3 = jnp.concatenate(
        [jnp.roll(x, 1, axis=1), x, jnp.roll(x, -1, axis=1)], axis=-1
    ).reshape(n, 3 * c_in)
    w3 = jnp.concatenate(
        [conv_w[:, :, k].T for k in range(3)], axis=0
    ).astype(jnp.float32)                                          # (3*c_in, d_model)

    # Hoisted sinusoid constants for the positional term: freq/phase per column.
    j = jnp.arange(d_model)
    parity = (j % 2).astype(jnp.float32)
    freq_row = jnp.exp((j.astype(jnp.float32) - parity) * (-(math.log(10000.0) / d_model)))
    phase_row = parity * (math.pi / 2.0)
    trig = jnp.stack([freq_row, phase_row], axis=0)                # (2, d_model)

    # Combined temporal table + offset indices (one-hot gather happens in-kernel on MXU).
    if has_mark:
        sizes = _FIELD_SIZES[freq]
        offs = [0]
        for s in sizes[:-1]:
            offs.append(offs[-1] + s)
        tbl = jnp.concatenate([_sin_table(c, d_model) for c in sizes], axis=0)
        n_rows = _round_up(tbl.shape[0], 128)                      # lane-dense one-hot / MXU K
        tbl = jnp.pad(tbl, ((0, n_rows - tbl.shape[0]), (0, 0)))
        n_fields = len(sizes)
        idx = (
            x_mark[..., :n_fields].astype(jnp.int32).reshape(n, n_fields)
            + jnp.array(offs, jnp.int32)[None, :]
        )
    else:
        tbl, idx, n_rows, n_fields = None, None, 0, 0

    # Tile sizing: big tiles (store-bound), multiple of 8 sublanes, but keep >= 2 grid
    # steps so v7x's 2 TensorCores both get work on short B*L.
    tile_n = max(8, _round_up(min(int(tile_n), max(8, (n + 1) // 2)), 8))
    grid = (pl.cdiv(n, tile_n),)

    out_itemsize = jnp.dtype(out_dtype).itemsize
    per_row_in = (3 * c_in + (n_fields if has_mark else 0)) * 4
    tile_bytes = tile_n * (per_row_in + d_model * 4 + d_model * out_itemsize)
    resident = (3 * c_in + n_rows + 2) * d_model * 4
    est_vmem = 2 * tile_bytes + 2 * resident + tile_n * n_rows * 4
    try:
        vmem_cap = int(getattr(pltpu.get_tpu_info(), "vmem_capacity_bytes", 64 * 2**20))
    except Exception:
        vmem_cap = 64 * 2**20
    vmem_limit = int(min(max(3 * est_vmem, 16 * 2**20), 48 * 2**20, (vmem_cap * 3) // 4))

    cost = pl.CostEstimate(
        flops=2 * n * (3 * c_in) * d_model + 2 * n * n_rows * d_model + 3 * n * d_model,
        transcendentals=n * d_model,                               # one sin per element
        bytes_accessed=(x3.size + (idx.size if has_mark else 0) + w3.size
                        + (tbl.size if has_mark else 0) + trig.size) * 4
                       + n * d_model * out_itemsize,
    )

    tok_spec = lambda shape: pl.BlockSpec(shape, lambda i: (i, 0))
    cst_spec = lambda shape: pl.BlockSpec(shape, lambda i: (0, 0))
    if has_mark:
        in_specs = [tok_spec((tile_n, 3 * c_in)), tok_spec((tile_n, n_fields)),
                    cst_spec((3 * c_in, d_model)), cst_spec((n_rows, d_model)),
                    cst_spec((2, d_model))]
        args = (x3, idx, w3, tbl, trig)
    else:
        in_specs = [tok_spec((tile_n, 3 * c_in)), cst_spec((3 * c_in, d_model)),
                    cst_spec((2, d_model))]
        args = (x3, w3, trig)

    out = pl.pallas_call(
        _make_kernel(L, has_mark),
        out_shape=jax.ShapeDtypeStruct((n, d_model), out_dtype),
        grid_spec=pltpu.PrefetchScalarGridSpec(
            num_scalar_prefetch=0,
            grid=grid,
            in_specs=in_specs,
            out_specs=pl.BlockSpec((tile_n, d_model), lambda i: (i, 0)),
        ),
        compiler_params=pltpu.CompilerParams(
            dimension_semantics=("parallel",),      # lets v7x's 2 TCs shard the token grid
            vmem_limit_bytes=vmem_limit,
        ),
        cost_estimate=cost,
    )(*args)

    return out.reshape(B, L, d_model)


# --------------------------- pure-JAX reference ------------------------------
def _ref_data_embedding(x, x_mark, conv_w):
    B, L, c_in = x.shape
    d_model = conv_w.shape[0]
    # TokenEmbedding: circular Conv1d (cross-correlation, no bias).
    xt = jnp.transpose(x.astype(jnp.float32), (0, 2, 1))            # (B, c_in, L)
    xp = jnp.pad(xt, ((0, 0), (0, 0), (1, 1)), mode="wrap")
    val = jax.lax.conv_general_dilated(
        xp, conv_w.astype(jnp.float32), window_strides=(1,), padding="VALID",
        dimension_numbers=("NCH", "OIH", "NCH"))
    val = jnp.transpose(val, (0, 2, 1))                             # (B, L, d_model)
    # PositionalEmbedding.
    out = val + _sin_table(L, d_model)[None, :, :]
    # TemporalEmbedding (fixed, freq='h'): month(13), day(32), weekday(7), hour(24).
    if x_mark is not None:
        xm = x_mark.astype(jnp.int32)
        for col, c in enumerate([13, 32, 7, 24]):
            out = out + _sin_table(c, d_model)[xm[:, :, col]]
    return out  # dropout: identity in eval mode


if __name__ == "__main__":
    c_in, d_model = 4, 32
    B, L = 2, 8

    key = jax.random.PRNGKey(0)
    k1, k2, k3 = jax.random.split(key, 3)
    x = jax.random.normal(k1, (B, L, c_in), dtype=jnp.float32)
    # x_mark columns: month [0,13), day [0,32), weekday [0,7), hour [0,24)
    maxes = jnp.array([13, 32, 7, 24], dtype=jnp.float32)
    x_mark = (jax.random.uniform(k2, (B, L, 4)) * maxes).astype(jnp.int32)
    # Conv weight, kaiming-normal-ish scale (fan_in = c_in * 3).
    conv_w = jax.random.normal(k3, (d_model, c_in, 3), dtype=jnp.float32) * (
        1.0 / math.sqrt(c_in * 3)
    )

    ref = _ref_data_embedding(x, x_mark, conv_w)

    # f32 output (default; matches PyTorch module dtype).
    out = jax.block_until_ready(data_embedding(x, x_mark, conv_w))
    assert out.shape == (B, L, d_model) and out.dtype == jnp.float32
    assert jnp.allclose(out, ref, atol=2e-2, rtol=2e-2), (
        "f32 mismatch vs reference: max |diff| = "
        + str(float(jnp.max(jnp.abs(out - ref))))
    )

    # bf16 store path (perf option for the store-bound kernel).
    out_bf16 = jax.block_until_ready(
        data_embedding(x, x_mark, conv_w, out_dtype=jnp.bfloat16)
    )
    assert out_bf16.dtype == jnp.bfloat16
    assert jnp.allclose(out_bf16.astype(jnp.float32), ref, atol=6e-2, rtol=6e-2), (
        "bf16 mismatch vs reference: max |diff| = "
        + str(float(jnp.max(jnp.abs(out_bf16.astype(jnp.float32) - ref))))
    )

    # x_mark=None path (value + positional only).
    ref_none = _ref_data_embedding(x, None, conv_w)
    out_none = jax.block_until_ready(data_embedding(x, None, conv_w))
    assert jnp.allclose(out_none, ref_none, atol=2e-2, rtol=2e-2), (
        "x_mark=None mismatch vs reference: max |diff| = "
        + str(float(jnp.max(jnp.abs(out_none - ref_none))))
    )

    print("KERNEL_OK")
</pallas_src>

<mosaic_0001>
module attributes {stable_mosaic.version = 11 : i64} {
  func.func @kernel(%arg0: i32, %arg1: memref<8x12xf32, #tpu.memory_space<vmem>>, %arg2: memref<8x4xi32, #tpu.memory_space<vmem>>, %arg3: memref<12x32xf32, #tpu.memory_space<vmem>>, %arg4: memref<128x32xf32, #tpu.memory_space<vmem>>, %arg5: memref<2x32xf32, #tpu.memory_space<vmem>>, %arg6: memref<8x32xf32, #tpu.memory_space<vmem>>) attributes {dimension_semantics = [#tpu.dimension_semantics<parallel>], iteration_bounds = array<i64: 2>, scalar_prefetch = 0 : i64, scratch_operands = 0 : i64, tpu.core_type = #tpu.core_type<tc>, window_params = [{transform_indices = @transform_0, window_bounds = array<i64: 8, 12>}, {transform_indices = @transform_1, window_bounds = array<i64: 8, 4>}, {pipeline_mode = #tpu.pipeline_mode<synchronous>, transform_indices = @transform_2, window_bounds = array<i64: 12, 32>}, {pipeline_mode = #tpu.pipeline_mode<synchronous>, transform_indices = @transform_3, window_bounds = array<i64: 128, 32>}, {pipeline_mode = #tpu.pipeline_mode<synchronous>, transform_indices = @transform_4, window_bounds = array<i64: 2, 32>}, {transform_indices = @transform_5, window_bounds = array<i64: 8, 32>}]} {
    %c0 = arith.constant 0 : index
    %c0_0 = arith.constant 0 : index
    %0 = vector.load %arg1[%c0, %c0_0] : memref<8x12xf32, #tpu.memory_space<vmem>>, vector<8x12xf32>
    %c0_1 = arith.constant 0 : index
    %c0_2 = arith.constant 0 : index
    %1 = vector.load %arg3[%c0_1, %c0_2] : memref<12x32xf32, #tpu.memory_space<vmem>>, vector<12x32xf32>
    %cst = arith.constant dense<0.000000e+00> : vector<8x32xf32>
    %2 = tpu.matmul %0, %1, %cst {dimension_numbers = #tpu.dot_dimension_numbers<[1], [0], [0], [1], [0, 0, 1, 1], [], []>} : vector<8x12xf32>, vector<12x32xf32>, vector<8x32xf32> -> vector<8x32xf32>
    %c0_3 = arith.constant 0 : index
    %c0_4 = arith.constant 0 : index
    %3 = vector.load %arg2[%c0_3, %c0_4] : memref<8x4xi32, #tpu.memory_space<vmem>>, vector<8x4xi32>
    %4 = tpu.iota {dimensions = array<i32: 1>} : vector<8x128xi32>
    %cst_5 = arith.constant 0.000000e+00 : f32
    %5 = vector.broadcast %cst_5 : f32 to vector<8x128xf32>
    %6 = vector.extract_strided_slice %3 {offsets = [0, 0], sizes = [8, 1], strides = [1, 1]} : vector<8x4xi32> to vector<8x1xi32>
    %7 = vector.broadcast %6 : vector<8x1xi32> to vector<8x128xi32>
    %8 = arith.cmpi eq, %7, %4 : vector<8x128xi32>
    %9 = arith.extui %8 : vector<8x128xi1> to vector<8x128xi32>
    %10 = arith.sitofp %9 : vector<8x128xi32> to vector<8x128xf32>
    %11 = arith.addf %5, %10 : vector<8x128xf32>
    %12 = vector.extract_strided_slice %3 {offsets = [0, 1], sizes = [8, 1], strides = [1, 1]} : vector<8x4xi32> to vector<8x1xi32>
    %13 = vector.broadcast %12 : vector<8x1xi32> to vector<8x128xi32>
    %14 = arith.cmpi eq, %13, %4 : vector<8x128xi32>
    %15 = arith.extui %14 : vector<8x128xi1> to vector<8x128xi32>
    %16 = arith.sitofp %15 : vector<8x128xi32> to vector<8x128xf32>
    %17 = arith.addf %11, %16 : vector<8x128xf32>
    %18 = vector.extract_strided_slice %3 {offsets = [0, 2], sizes = [8, 1], strides = [1, 1]} : vector<8x4xi32> to vector<8x1xi32>
    %19 = vector.broadcast %18 : vector<8x1xi32> to vector<8x128xi32>
    %20 = arith.cmpi eq, %19, %4 : vector<8x128xi32>
    %21 = arith.extui %20 : vector<8x128xi1> to vector<8x128xi32>
    %22 = arith.sitofp %21 : vector<8x128xi32> to vector<8x128xf32>
    %23 = arith.addf %17, %22 : vector<8x128xf32>
    %24 = vector.extract_strided_slice %3 {offsets = [0, 3], sizes = [8, 1], strides = [1, 1]} : vector<8x4xi32> to vector<8x1xi32>
    %25 = vector.broadcast %24 : vector<8x1xi32> to vector<8x128xi32>
    %26 = arith.cmpi eq, %25, %4 : vector<8x128xi32>
    %27 = arith.extui %26 : vector<8x128xi1> to vector<8x128xi32>
    %28 = arith.sitofp %27 : vector<8x128xi32> to vector<8x128xf32>
    %29 = arith.addf %23, %28 : vector<8x128xf32>
    %c0_6 = arith.constant 0 : index
    %c0_7 = arith.constant 0 : index
    %30 = vector.load %arg4[%c0_6, %c0_7] : memref<128x32xf32, #tpu.memory_space<vmem>>, vector<128x32xf32>
    %cst_8 = arith.constant dense<0.000000e+00> : vector<8x32xf32>
    %31 = tpu.matmul %29, %30, %cst_8 {dimension_numbers = #tpu.dot_dimension_numbers<[1], [0], [0], [1], [0, 0, 1, 1], [], []>} : vector<8x128xf32>, vector<128x32xf32>, vector<8x32xf32> -> vector<8x32xf32>
    %32 = arith.addf %2, %31 : vector<8x32xf32>
    %c0_9 = arith.constant 0 : index
    %c0_10 = arith.constant 0 : index
    %33 = vector.load %arg5[%c0_9, %c0_10] : memref<2x32xf32, #tpu.memory_space<vmem>>, vector<1x32xf32>
    %c1 = arith.constant 1 : index
    %c0_11 = arith.constant 0 : index
    %34 = vector.load %arg5[%c1, %c0_11] : memref<2x32xf32, #tpu.memory_space<vmem>>, vector<1x32xf32>
    %35 = tpu.iota {dimensions = array<i32: 0>} : vector<8x1xi32>
    %c8_i32 = arith.constant 8 : i32
    %36 = arith.muli %arg0, %c8_i32 : i32
    %37 = vector.broadcast %36 : i32 to vector<8x1xi32>
    %38 = arith.addi %37, %35 : vector<8x1xi32>
    %c8_i32_12 = arith.constant 8 : i32
    %c0_i32 = arith.constant 0 : i32
    %39 = arith.cmpi eq, %c8_i32_12, %c0_i32 : i32
    %c1_i32 = arith.constant 1 : i32
    %40 = arith.select %39, %c1_i32, %c8_i32_12 : i32
    %41 = vector.broadcast %40 : i32 to vector<8x1xi32>
    %42 = arith.remsi %38, %41 : vector<8x1xi32>
    %c0_i32_13 = arith.constant 0 : i32
    %43 = vector.broadcast %c0_i32_13 : i32 to vector<8x1xi32>
    %44 = arith.cmpi ne, %42, %43 : vector<8x1xi32>
    %c0_i32_14 = arith.constant 0 : i32
    %45 = vector.broadcast %c0_i32_14 : i32 to vector<8x1xi32>
    %46 = arith.cmpi slt, %42, %45 : vector<8x1xi32>
    %c0_i32_15 = arith.constant 0 : i32
    %47 = arith.cmpi slt, %40, %c0_i32_15 : i32
    %48 = vector.broadcast %47 : i1 to vector<8x1xi1>
    %49 = vector.broadcast %48 : vector<8x1xi1> to vector<8x1xi1>
    %50 = arith.xori %46, %49 : vector<8x1xi1>
    %51 = arith.andi %50, %44 : vector<8x1xi1>
    %52 = vector.broadcast %40 : i32 to vector<8x1xi32>
    %53 = arith.addi %42, %52 : vector<8x1xi32>
    %54 = arith.select %51, %53, %42 : vector<8x1xi1>, vector<8x1xi32>
    %55 = arith.sitofp %54 : vector<8x1xi32> to vector<8x1xf32>
    %56 = vector.broadcast %55 : vector<8x1xf32> to vector<8x32xf32>
    %57 = vector.broadcast %33 : vector<1x32xf32> to vector<8x32xf32>
    %58 = arith.mulf %56, %57 : vector<8x32xf32>
    %59 = vector.broadcast %34 : vector<1x32xf32> to vector<8x32xf32>
    %60 = arith.addf %58, %59 : vector<8x32xf32>
    %61 = math.sin %60 : vector<8x32xf32>
    %62 = arith.addf %32, %61 : vector<8x32xf32>
    %c0_16 = arith.constant 0 : index
    %c0_17 = arith.constant 0 : index
    %63 = vector.load %arg6[%c0_16, %c0_17] : memref<8x32xf32, #tpu.memory_space<vmem>>, vector<8x32xf32>
    tpu.vector_store %arg6[%c0_16, %c0_17], %62 {strides = array<i32>} : memref<8x32xf32, #tpu.memory_space<vmem>>, vector<8x32xf32>,
    return
  }
  func.func @transform_0(%arg0: i32) -> (i32, i32) {
    %c0_i32 = arith.constant 0 : i32
    %c0_i32_0 = arith.constant 0 : i32
    return %arg0, %c0_i32 : i32, i32
  }
  func.func @transform_1(%arg0: i32) -> (i32, i32) {
    %c0_i32 = arith.constant 0 : i32
    %c0_i32_0 = arith.constant 0 : i32
    return %arg0, %c0_i32 : i32, i32
  }
  func.func @transform_2(%arg0: i32) -> (i32, i32) {
    %c0_i32 = arith.constant 0 : i32
    %c0_i32_0 = arith.constant 0 : i32
    %c0_i32_1 = arith.constant 0 : i32
    return %c0_i32, %c0_i32_0 : i32, i32
  }
  func.func @transform_3(%arg0: i32) -> (i32, i32) {
    %c0_i32 = arith.constant 0 : i32
    %c0_i32_0 = arith.constant 0 : i32
    %c0_i32_1 = arith.constant 0 : i32
    return %c0_i32, %c0_i32_0 : i32, i32
  }
  func.func @transform_4(%arg0: i32) -> (i32, i32) {
    %c0_i32 = arith.constant 0 : i32
    %c0_i32_0 = arith.constant 0 : i32
    %c0_i32_1 = arith.constant 0 : i32
    return %c0_i32, %c0_i32_0 : i32, i32
  }
  func.func @transform_5(%arg0: i32) -> (i32, i32) {
    %c0_i32 = arith.constant 0 : i32
    %c0_i32_0 = arith.constant 0 : i32
    return %arg0, %c0_i32 : i32, i32
  }
}

</mosaic_0001>

<bundles_post_ra>
// kernel: tpu_custom_call.1
= control target key start
LH: loop header
LB: loop body
LE: loop exit
PB: predicated region body
PF: predicated region fallthrough
CT: control target
= control target key end

     0   :  { %10 = vsyncpa [#allocation3], 0  ;;  %s1163_s0 = inlined_call_operand.vmem [shape: f32[16,12], index: 0, kind: input, shape index: {}]   ;;  %s1164_s1 = inlined_call_operand.vmem [shape: s32[16,4], index: 1, kind: input, shape index: {}]   ;;  %s1165_s2 = inlined_call_operand.vmem [shape: f32[12,32], index: 2, kind: input, shape index: {}]   ;;  %s1166_s3 = inlined_call_operand.vmem [shape: f32[128,32], index: 3, kind: input, shape index: {}]   ;;  %s1167_s4 = inlined_call_operand.vmem [shape: f32[2,32], index: 4, kind: input, shape index: {}]   ;;  %s1168_s5 = inlined_call_operand.hbm [shape: f32[16,32], index: 5, kind: output, shape index: {}]  }
   0x1   :  { %12 = vsyncpa [#allocation3 + $0x1], 0  ;;  %s947_s18 = smov 0   ;;  %s949_s19 = smov 0  }
   0x2   :  { %s951_s20 = smov 0   ;;  %s953_s21 = smov 0  }
   0x3 LB: > { %s968_s22 = sadd.s32 4294967295, %s900_s21   ;;  %s657_s23 = sadd.s32 4294967294, %s900_s21   ;;  %s900_s21 = sphi %s953_s21, %s1174_s21   ;;  %s896_s20 = sphi %s951_s20, %s1173_s20   ;;  %s892_s19 = sphi %s949_s19, %s1172_s19   ;;  %s888_s18 = sphi %s947_s18, %s1171_s18  }
   0x4   : > { %s972_s24 = sadd.s32 1, %s900_s21   ;;  %s140_s25 = sadd.s32 1, %s896_s20 }
   0x5   : > { %s137_s26 = ssub.s32 %s900_s21, %s972_s24  ;;  %p150_p0 = scmp.ne.s32.totalorder %s896_s20, %s892_s19 }
   0x6   : > { %p138_p1 = scmp.eq.s32.totalorder %s137_s26, 0  ;;  %p151_p2 = scmp.eq.s32.totalorder %s968_s22, 1 }
   0x7   : > { %p156_p3 = scmp.ne.s32.totalorder %s892_s19, %s888_s18  ;;  %p157_p4 = scmp.eq.s32.totalorder %s657_s23, 1 }
   0x8   : > { %s983_s27 = scalar_select %p138_p1, %s896_s20, %s140_s25  }
   0x9   : > { %p985_p5 = por %p151_p2, %p150_p0  ;;  %p989_p6 = por %p157_p4, %p156_p3 }
   0xa   : > { %p660_p7 = scmp.ge.s32.totalorder %s900_s21, 1  ;;  %p198_p8 = scmp.lt.s32.totalorder %s900_s21, 3 }
   0xc   : > { %p199_p9 = pnand %p660_p7, %p198_p8 }
   0xd   : > { %p229_p10 = scmp.lt.s32.totalorder (!%p199_p9), %s968_s22, 1  ;;  %v271_v0 = vld [vmem:[%s1166_s3] sm:$0xff] (!%p199_p9)  ;;  %v902_v1 = vmov (!%p199_p9), 0   ;;  %v903_v2 = vmov (!%p199_p9), 2   ;;  %v272_v3 = vld [vmem:[%s1166_s3 + $0x8] sm:$0xff] (!%p199_p9)  ;;  %v273_v4 = vld [vmem:[%s1166_s3 + $0x10] sm:$0xff] (!%p199_p9)  ;;  %v241_v35 = vlaneseq (!%p199_p9) }
   0xe   : > { %202 = sbr.rel (%p199_p9) target bundleno = 397 (0x18d), region = 40  ;;  %829 = vset.pattern.permute.xlu0 (!%p199_p9), %v902_v1  ;;  %831 = vset.pattern.permute.xlu1 (!%p199_p9), %v903_v2  ;;  %v274_v5 = vld [vmem:[%s1166_s3 + $0x18] sm:$0xff] (!%p199_p9)  ;;  %v904_v6 = vmov (!%p199_p9), 0.0|0.0   ;;  %v745_v7 = vpack.c.bf16 (!%p199_p9), %v272_v3, %v271_v0  ;;  %v275_v10 = vld [vmem:[%s1166_s3 + $0x20] sm:$0xff] (!%p199_p9)  ;;  %v276_v11 = vld [vmem:[%s1166_s3 + $0x28] sm:$0xff] (!%p199_p9)  ;;  %v905_v15 = vmov (!%p199_p9), 1  }
   0xf   : > { %744 = vmatprep.subr.bf16.mxu0 (!%p199_p9), %v904_v6  ;;  %768 = vmatprep.subr.bf16.mxu1 (!%p199_p9), %v904_v6  ;;  %v748_v8 = vpack.c.bf16 (!%p199_p9), %v274_v5, %v273_v4  ;;  %v751_v12 = vpack.c.bf16 (!%p199_p9), %v276_v11, %v275_v10  ;;  %v277_v13 = vld [vmem:[%s1166_s3 + $0x30] sm:$0xff] (!%p199_p9)  ;;  %v278_v14 = vld [vmem:[%s1166_s3 + $0x38] sm:$0xff] (!%p199_p9)  ;;  %v906_v16 = vmov (!%p199_p9), 3   ;;  %v238_v18 = vld [vmem:[%s1165_s2] sm:$0xff] (!%p199_p9)  ;;  %vm361_vm0 = vcmask (!%p199_p9), 1043456   ;;  %s670_s25 = sshll.u32 (!%p199_p9), %s968_s22, 3 }
  0x10   : > { %746 = vmatpush3.bf16.msra.mxu0 (!%p199_p9), %v745_v7  ;;  %v754_v17 = vpack.c.bf16 (!%p199_p9), %v278_v14, %v277_v13  ;;  %v239_v19 = vld [vmem:[%s1165_s2 + $0x8] sm:$0xf] (!%p199_p9)  ;;  %v279_v20 = vld [vmem:[%s1166_s3 + $0x40] sm:$0xff] (!%p199_p9)  ;;  %vm907_vm1 = vmmov (!%p199_p9), 1   ;;  %v281_v24 = vld [vmem:[%s1166_s3 + $0x50] sm:$0xff] (!%p199_p9)  ;;  %vm908_vm3 = vmmov (!%p199_p9), 0   ;;  %v440_v49 = vstv (!%p199_p9), %s670_s25 }
  0x11   : > { %747 = vmatprep.subr.bf16.mxu0 (!%p199_p9), %v904_v6  ;;  %v280_v21 = vld [vmem:[%s1166_s3 + $0x48] sm:$0xff] (!%p199_p9)  ;;  %v769_v22 = vpack.c.bf16 (!%p199_p9), %v239_v19, %v238_v18  ;;  %vm770_vm2 = vmpackc.low (!%p199_p9), %vm361_vm0, %vm907_vm1  ;;  %v282_v25 = vld [vmem:[%s1166_s3 + $0x58] sm:$0xff] (!%p199_p9)  ;;  %v909_v26 = vmov (!%p199_p9), 0.0   ;;  %vm357_vm4 = vcmask (!%p199_p9), 97280   ;;  %v242_v36 = vand.u32 (!%p199_p9), 127, %v241_v35  ;;  %s226_s8 = sand.u32 (!%p199_p9), 1, %s892_s19  }
  0x12   : > { %v757_v23 = vpack.c.bf16 (!%p199_p9), %v280_v21, %v279_v20  ;;  %741 = vmatprep.mubr.msk.f32.mxu1 (!%p199_p9), %vm908_vm3, %v909_v26  ;;  %734 = vmatprep.mubr.msk.f32.mxu0 (!%p199_p9), %vm908_vm3, %v909_v26  ;;  %v760_v28 = vpack.c.bf16 (!%p199_p9), %v282_v25, %v281_v24  ;;  %v283_v29 = vld [vmem:[%s1166_s3 + $0x60] sm:$0xff] (!%p199_p9)  ;;  %v284_v30 = vld [vmem:[%s1166_s3 + $0x68] sm:$0xff] (!%p199_p9)  ;;  %v285_v32 = vld [vmem:[%s1166_s3 + $0x70] sm:$0xff] (!%p199_p9)  ;;  %v438_v48 = vshrl.u32 (!%p199_p9), %v241_v35, 7  ;;  %v912_v13 = vmov (!%p199_p9), 1326507024  }
  0x13   : > { %771 = vmatpush3.bf16.msk.msra.mxu1 (!%p199_p9), %vm770_vm2, %v769_v22  ;;  %v763_v31 = vpack.c.bf16 (!%p199_p9), %v284_v30, %v283_v29  ;;  %v286_v33 = vld [vmem:[%s1166_s3 + $0x78] sm:$0xff] (!%p199_p9)  ;;  %v672_v59 = vld [vmem:[%s1167_s4] ss:$0 sm:$0xff] (!%p199_p9)  ;;  %v673_v61 = vld [vmem:[%s1167_s4 + $0x1] ss:$0 sm:$0xff] (!%p199_p9)  ;;  %s661_s9 = sshll.u32 (!%p199_p9), %s226_s8, 3 }
  0x14   : > { %749 = vmatpush3.bf16.msra.mxu0 (!%p199_p9), %v748_v8  ;;  %v766_v34 = vpack.c.bf16 (!%p199_p9), %v286_v33, %v285_v32  ;;  %v441_v50 = vadd.s32 (!%p199_p9), %v440_v49, %v438_v48  ;;  %v911_v8 = vmov (!%p199_p9), 920167782   ;;  %v915_v21 = vmov (!%p199_p9), 2131351028   ;;  %s679_s10 = sshll.u32 (!%p199_p9), %s968_s22, 7  ;;  %s573_s16 = scalar_lea.sflag (!%p199_p9), [#allocation3], %s226_s8 }
  0x15   : > { %s1009_s13 = scalar_select %p229_p10, %s968_s22, 1  ;;  %750 = vmatprep.subr.bf16.mxu0 %v904_v6 }
  0x16   : > { %v443_v51 = vsub.s32 0, %v441_v50  ;;  %vm442_vm9 = vcmp.lt.s32.totalorder %v441_v50, 0  ;;  %s1121_s15 = scalar_lea.hbm %s1168_s5, %s679_s10 }
  0x17   : > { %s662_s14 = sshll.u32 %s1009_s13, 3  ;;  %s228_s13 = scalar_lea.vmem [#allocation2], %s661_s9 }
  0x18   : > { %s236_s17 = scalar_lea.vmem %s1164_s1, %s662_s14  ;;  %752 = vmatpush3.bf16.msra.mxu0 %v751_v12  ;;  %s232_s6 = scalar_lea.vmem %s1163_s0, %s662_s14  ;;  %v671_v52 = vmin.u32 %v443_v51, %v441_v50 }
  0x19   : > { %v240_v9 = vld [vmem:[%s236_s17] sm:$0xff]  ;;  %753 = vmatprep.subr.bf16.mxu0 %v904_v6  ;;  %s586_s14 = sshll.u32 %s228_s13, 4  ;;  %s916_s17 = smov [#allocation2]   ;;  %s1123_s14 = int_to_ptr.vmem [resolvable:$true] %s586_s14 }
  0x1a   : > { %244 = vperm.xlu0 %829, %v240_v9   ;;  %258 = vperm.xlu1 %831, %v240_v9   ;;  %v237_v27 = vld [vmem:[%s232_s6] sm:$0xff]  ;;  %v446_v53 = vand.u32 7, %v671_v52  ;;  %s838_s22 = scalar_lea.vmem %s1123_s14, 128  ;;  %s842_s23 = sshll.u32 %s916_s17, 4  ;;  %s843_s23 = int_to_ptr.vmem [resolvable:$false] %s842_s23 }
  0x1b   : > { %742 = vmatmul.mubr.msk.f32.vlgmr.msra.gmra.mrb[0].mxu1 %vm357_vm4, %v237_v27  ;;  %p839_p11 = scmp.ne.s32.totalorder %s1123_s14, %s838_s22  ;;  %s844_s25 = scalar_lea.vmem %s843_s23, 256 }
  0x1c   : > { %755 = vmatpush3.bf16.msra.mxu0 %v754_v17  ;;  %v447_v54 = vsub.s32 0, %v446_v53  ;;  %v914_v17 = vmov 2475754826   ;;  %p845_p0 = scmp.lt.s32.totalorder %s1123_s14, %s843_s23  ;;  %p846_p1 = scmp.lt.s32.totalorder %s844_s25, %s838_s22 }
  0x1d   : > { %756 = vmatprep.subr.bf16.mxu0 %v904_v6  ;;  %p840_p12 = pnand %p839_p11, %p985_p5 }
  0x1e   : > { %830 = vset.pattern.permute.xlu0 %v905_v15  ;;  %832 = vset.pattern.permute.xlu1 %v906_v16  ;;  %v448_v55 = vsel %vm442_vm9, %v447_v54, %v446_v53  ;;  %v913_v15 = vmov 683565275   ;;  %p847_p2 = por %p846_p1, %p845_p0 }
  0x1f   : > { %251 = vperm.xlu0 %830, %v240_v9   ;;  %265 = vperm.xlu1 %832, %v240_v9   ;;  %vm449_vm10 = vcmp.ne.s32.totalorder %v448_v55, 0  ;;  %vm450_vm11 = vcmp.lt.s32.totalorder %v448_v55, 0  ;;  %v452_v56 = vadd.s32 8, %v448_v55  ;;  %p841_p13 = pneg %p840_p12 }
  0x20   : > { %758 = vmatpush3.bf16.msra.mxu0 %v757_v23  ;;  %vm451_vm12 = vmand %vm450_vm11, %vm449_vm10  ;;  %vm570_vm10 = vcmask 261120  }
  0x21   : > { %759 = vmatprep.subr.bf16.mxu0 %v904_v6  ;;  %v453_v57 = vsel %vm451_vm12, %v452_v56, %v448_v55  ;;  %p848_p3 = pnand %p847_p2, %p841_p13 }
  0x22   : > { %v454_v58 = vcvt.s32.f32 %v453_v57 }
  0x23   : > { %833 = vset.pattern.permute.xlu0 %v906_v16 }
  0x24   : > { %761 = vmatpush3.bf16.msra.mxu0 %v760_v28  ;;  %v459_v60 = vmul.f32 %v672_v59, %v454_v58 }
  0x25   : > { %762 = vmatprep.subr.bf16.mxu0 %v904_v6 }
  0x26   : > { %v1080_v62 = vadd.f32 %v673_v61, %v459_v60 }
  0x28   : > { %764 = vmatpush3.bf16.msra.mxu0 %v763_v31  ;;  %v468_v63 = vand.u32 2139095040, %v1080_v62  ;;  %v465_v10 = vand.u32 2147483647, %v1080_v62  ;;  %vm467_vm4 = vcmp.lt.s32.totalorder %v1080_v62, 0  ;;  %vm557_vm9 = vweird.f32 %v1080_v62 }
  0x29   : > { %765 = vmatprep.subr.bf16.mxu0 %v904_v6  ;;  %v910_v6 = vmov 2102212464  }
  0x2a   : > { %v469_v0 = vshrl.u32 %v468_v63, 23  ;;  %v472_v27 = vand.u32 8388607, %v465_v10 }
  0x2c   : > { %767 = vmatpush3.bf16.msra.mxu0 %v766_v34  ;;  %v674_v1 = vadd.s32 4294967169, %v469_v0  ;;  %v473_v33 = vor.u32 8388608, %v472_v27 }
  0x2e   : > { %v475_v2 = vadd.s32 1, %v674_v1 }
  0x30   : > { %vm476_vm13 = vcmp.gt.s32.totalorder %v475_v2, 0 }
  0x31   : > { %v477_v3 = vsel %vm476_vm13, %v475_v2, 0 }
  0x32   : > { %v479_v4 = vand.u32 31, %v477_v3  ;;  %v478_v11 = vshrl.u32 %v477_v3, 5 }
  0x34   : > { %v480_v5 = vsub.s32 32, %v479_v4  ;;  %v491_v7 = vshll.u32 %v910_v6, %v479_v4  ;;  %v494_v12 = vshll.u32 %v911_v8, %v479_v4  ;;  %v482_v16 = vshll.u32 %v913_v15, %v479_v4 }
  0x35   : > { %v485_v20 = vshll.u32 %v914_v17, %v479_v4  ;;  %v488_v23 = vshll.u32 %v915_v21, %v479_v4  ;;  %vm500_vm14 = vcmp.lt.s32.totalorder %v478_v11, 4  ;;  %vm497_vm15 = vcmp.lt.s32.totalorder %v478_v11, 1 }
  0x36   : > { %v492_v9 = vshrl.u32 %v911_v8, %v480_v5  ;;  %v495_v14 = vshrl.u32 %v912_v13, %v480_v5  ;;  %v483_v18 = vshrl.u32 %v914_v17, %v480_v5  ;;  %v486_v22 = vshrl.u32 %v915_v21, %v480_v5 }
  0x37   : > { %v489_v24 = vshrl.u32 %v910_v6, %v480_v5  ;;  %vm499_vm0 = vcmp.lt.s32.totalorder %v478_v11, 3  ;;  %vm498_vm1 = vcmp.lt.s32.totalorder %v478_v11, 2 }
  0x38   : > { %v493_v25 = vor.u32 %v492_v9, %v491_v7  ;;  %v496_v28 = vor.u32 %v495_v14, %v494_v12  ;;  %v484_v29 = vor.u32 %v483_v18, %v482_v16  ;;  %v487_v30 = vor.u32 %v486_v22, %v485_v20 }
  0x39   : > { %v490_v31 = vor.u32 %v489_v24, %v488_v23 }
  0x3a   : > { %v506_v32 = vsel %vm500_vm14, %v493_v25, 920167782  ;;  %v510_v34 = vsel %vm500_vm14, %v496_v28, 1326507024  ;;  %v505_v35 = vsel %vm497_vm15, %v484_v29, %v487_v30 }
  0x99   : > { %v245_v37 = vpop.permute.xlu0 %244  ;;  %v259_v38 = vpop.permute.xlu1 %258 }
  0x9a   : > { %vm246_vm5 = vcmp.eq.s32.totalorder %v245_v37, %v242_v36  ;;  %vm260_vm6 = vcmp.eq.s32.totalorder %v259_v38, %v242_v36  ;;  %v509_v37 = vsel %vm497_vm15, %v487_v30, %v490_v31  ;;  %v511_v38 = vsel %vm499_vm0, %v493_v25, %v510_v34 }
  0x9b   : > { %v664_v41 = vsel %vm246_vm5, 1.0, %v909_v26  ;;  %v666_v44 = vsel %vm260_vm6, 1.0, %v909_v26  ;;  %vm466_vm5 = vcmp.le.f32.partialorder %v465_v10, 0.7853982 }
  0x9e   : > { %v252_v39 = vpop.permute.xlu0 %251  ;;  %v266_v40 = vpop.permute.xlu1 %265 }
  0x9f   : > { %vm253_vm7 = vcmp.eq.s32.totalorder %v252_v39, %v242_v36  ;;  %vm267_vm8 = vcmp.eq.s32.totalorder %v266_v40, %v242_v36  ;;  %v507_v36 = vsel %vm499_vm0, %v490_v31, %v506_v32  ;;  %v513_v39 = vshll.u32 %v473_v33, 8 }
  0xa0   : > { %v665_v42 = vsel %vm253_vm7, 1.0, %v909_v26  ;;  %v667_v45 = vsel %vm267_vm8, 1.0, %v909_v26  ;;  %v508_v40 = vsel %vm498_vm1, %v505_v35, %v507_v36 }
  0xa1   : > { %v256_v43 = vadd.f32 %v665_v42, %v664_v41  ;;  %v512_v41 = vsel %vm498_vm1, %v509_v37, %v511_v38 }
  0xa3   : > { %v263_v46 = vadd.f32 %v666_v44, %v256_v43  ;;  %v1096_v42 = vmul.u32.u64.low %v513_v39, %v508_v40  ;;  %v1097_v43 = vmul.u32.u64.high %v513_v39, %v508_v40, %v1096_v42  ;;  %v481_v44 = vshrl.u32 %v913_v15, %v480_v5 }
  0xa5   : > { %v270_v47 = vadd.f32 %v667_v45, %v263_v46  ;;  %v1099_v45 = vmul.u32.u64.low %v513_v39, %v512_v41  ;;  %v1100_v46 = vmul.u32.u64.high %v513_v39, %v512_v41, %v1099_v45  ;;  %v501_v48 = vsel %vm497_vm15, %v481_v44, %v484_v29 }
  0xa6   : > { %v523_v51 = vadd.s32 1, %v1097_v43 }
  0xa7   : > { %735 = vmatmul.mubr.f32.vlgmr.msra.gmra.mrb[0].mxu0 %v270_v47  ;;  %v502_v47 = vsel %vm500_vm14, %v490_v31, 2102212464  ;;  %vm522_vm2 = vc.u32 %v1100_v46, %v1096_v42  ;;  %v521_v2 = vadd.s32 %v1096_v42, %v1100_v46 }
  0xa8   : > { %v503_v49 = vsel %vm499_vm0, %v487_v30, %v502_v47  ;;  %v524_v53 = vsel %vm522_vm2, %v523_v51, %v1097_v43 }
  0xa9   : > { %v504_v50 = vsel %vm498_vm1, %v501_v48, %v503_v49 }
  0xaa   : > { %v520_v52 = vmul.u32 %v513_v39, %v504_v50 }
  0xac   : > { %v525_v54 = vadd.s32 %v524_v53, %v520_v52 }
  0xae   : > { %v526_v55 = vadd.s32 536870912, %v525_v54 }
  0xb0   : > { %v527_v56 = vshrl.u32 %v526_v55, 30 }
  0xb2   : > { %v528_v57 = vshll.u32 %v527_v56, 30  ;;  %v551_v16 = vsub.s32 4, %v527_v56 }
  0xb4   : > { %v529_v58 = vsub.s32 %v525_v54, %v528_v57  ;;  %v552_v18 = vsel %vm467_vm4, %v551_v16, %v527_v56 }
  0xb5   : > { %v554_v20 = vsel %vm466_vm5, 0, %v552_v18 }
  0xb6   : > { %v531_v59 = vsub.s32 0, %v529_v58  ;;  %v558_v21 = vadd.s32 3, %v554_v20 }
  0xb8   : > { %v675_v60 = vmin.u32 %v531_v59, %v529_v58  ;;  %v559_v24 = vand.u32 3, %v558_v21 }
  0xba   : > { %v533_v61 = vclz %v675_v60  ;;  %vm561_vm6 = vcmp.eq.s32.totalorder %v559_v24, 0  ;;  %vm564_vm7 = vcmp.eq.s32.totalorder %v559_v24, 2  ;;  %vm560_vm8 = vcmp.lt.s32.totalorder %v559_v24, 2 }
  0xbc   : > { %v676_v63 = vadd.s32 4294967294, %v533_v61 }
  0xbe   : > { %vm677_vm3 = vcmp.lt.s32.totalorder %v676_v63, 0 }
  0xbf   : > { %v536_v0 = vsel %vm677_vm3, 0, %v676_v63 }
  0xc0   : > { %v541_v1 = vsub.s32 4294967266, %v536_v0  ;;  %v537_v3 = vsub.s32 32, %v536_v0  ;;  %v538_v5 = vshll.u32 %v529_v58, %v536_v0 }
  0xc2   : > { %v542_v4 = vadd.s32 127, %v541_v1  ;;  %v539_v6 = vshrl.u32 %v521_v2, %v537_v3 }
  0xc4   : > { %v543_v7 = vshll.u32 %v542_v4, 23  ;;  %v540_v8 = vor.u32 %v539_v6, %v538_v5 }
  0xc6   : > { %v544_v9 = vor.u32 4788187, %v543_v7  ;;  %v547_v12 = vcvt.s32.f32 %v540_v8 }
  0xc8   : > { %v545_v11 = vand.u32 2147483647, %v544_v9 }
  0xca   : > { %v548_v13 = vmul.f32 %v547_v12, %v545_v11 }
  0xcc   : > { %v549_v14 = vxor.u32 2147483648, %v548_v13 }
  0xce   : > { %v550_v15 = vsel %vm467_vm4, %v549_v14, %v548_v13 }
  0xcf   : > { %v553_v17 = vsel %vm466_vm5, %v1080_v62, %v550_v15 }
  0xd0   : > { %834 = vcosq.f32 %v553_v17 }
  0xd1   : > { %836 = vsinq.f32 %v553_v17 }
  0xda   : > { %v835_v22 = vpop.eup %834 }
  0xdb   : > { %v837_v23 = vpop.eup %836 }
  0xdc   : > { %v562_v25 = vxor.u32 2147483648, %v837_v23 }
  0xde   : > { %v563_v10 = vsel %vm561_vm6, %v835_v22, %v562_v25 }
  0xee   : > { %v1084_v19 = vpop.f32.mrb[0].mxu1 }
  0xef   : > { %v743_v26 = vpop.f32.mrb[1].mxu1 }
  0xf0   : > { %v565_v26 = vxor.u32 2147483648, %v835_v22 }
  0xf2   : > { %v566_v27 = vsel %vm564_vm7, %v565_v26, %v837_v23 }
  0xf3   : > { %v567_v28 = vsel %vm560_vm8, %v563_v10, %v566_v27 }
  0xf4   : > { %v568_v30 = vsel %vm557_vm9, nan, %v567_v28 }
 0x17a   : > { %v353_v29 = vpop.f32.mrb[0].mxu0 }
 0x17b   : > { %v432_v31 = vadd.f32 %v1084_v19, %v353_v29  ;;  %v736_v32 = vpop.f32.mrb[1].mxu0 }
 0x17d   : > { %v569_v33 = vadd.f32 %v568_v30, %v432_v31 }
 0x17f   : > { %571 = vst.msk [vmem:[%s228_s13] sm:$0xff] %vm570_vm10, %v569_v33 }
 0x180   : > { %851 = shalt.err (!%p848_p3)
}
 0x181   : > { %s852_s26 = scalar_lea.hbm %s1121_s15, 128  ;;  %s856_s7 = scalar_lea.hbm %s1168_s5, 256 }
 0x182   : > { %p853_p4 = scmp.ne.s32.totalorder %s1121_s15, %s852_s26  ;;  %p857_p9 = scmp.lt.u32.totalorder %s1121_s15, %s1168_s5 }
 0x183   : > { %p858_p10 = scmp.lt.u32.totalorder %s856_s7, %s852_s26  ;;  %p860_p12 = scmp.lt.u32.totalorder %s852_s26, %s1121_s15 }
 0x184   : > { %p854_p7 = pnand %p853_p4, %p985_p5 }
 0x185   : > { %p859_p11 = por %p858_p10, %p857_p9 }
 0x186   : > { %p855_p8 = pneg %p854_p7 }
 0x187   : > { %p861_p13 = por %p860_p12, %p859_p11 }
 0x189   : > { %p862_p0 = pnand %p861_p13, %p855_p8 }
 0x18b   : > { %865 = shalt.err (!%p862_p0)
}
 0x18c   : > { %776 = dma.vmem_to_hbm [thread:$0]  (%p985_p5), %s1123_s14, 128, %s1121_s15, %s573_s16  }
 0x18d PF: > { %p782_p1 = scmp.ge.s32.totalorder %s900_s21, 2  ;;  %s598_s10 = sand.u32 1, %s888_s18  }
 0x18e   : > { %s599_s13 = scalar_lea.sflag [#allocation3], %s598_s10 }
 0x18f   : > { %p779_p2 = pnand %p782_p1, %p989_p6 }
 0x191   : > { %883 = dma.done.wait (!%p779_p2), %s599_s13, 128  }
 0x192   : > { %885 = vsyncadd (!%p779_p2), %s599_s13, 4294967168  ;;  %p15_p3 = scmp.ge.s32.totalorder %s972_s24, 4   ;;  %s1171_s18 = smov %s892_s19 }
 0x193   : > { %s1172_s19 = smov %s896_s20  ;;  %s1173_s20 = smov %s983_s27 }
 0x194   : > { %s1174_s21 = smov %s972_s24  ;;  %17 = sbr.rel (!%p15_p3) target bundleno = 3 (0x3), region = 78 }
 0x19b   :  { %604 = vsyncpa [#allocation3], 1 }
 0x19c   :  { %606 = vsyncpa [#allocation3 + $0x1], 1 }

</bundles_post_ra>
